<compile_context>
chip_gen: v7x
topology: tpu7x:2x2x1
jax: 0.10.0
libtpu: 0.0.40
codegen_flags: <defaults>
</compile_context>

<pallas_src>
import math
import functools

import jax
import jax.numpy as jnp
from jax import lax
from jax.experimental import pallas as pl
from jax.experimental.pallas import tpu as pltpu

_EPS = 1e-12            # F.normalize default: x / max(||x||_2, eps)
_EPS_SQ = _EPS * _EPS   # max(||x||, eps) == sqrt(max(||x||^2, eps^2))


def _arc_margin_kernel(x_ref, w_ref, inv_wn_ref, label_ref, o_ref, *,
                       s, cos_m, sin_m, th, mm, easy_margin):
    # x_ref:      (Bp, D)  compute dtype, rows already L2-normalized (resident)
    # w_ref:      (Ct, D)  compute dtype, raw weight class tile (streamed)
    # inv_wn_ref: (1, Ct)  f32 inverse class-weight norms (streamed, tiny)
    # label_ref:  (Bp, 1)  int32 (resident)
    xn = x_ref[...]
    w = w_ref[...]
    inv_wn = inv_wn_ref[...]
    label = label_ref[...]

    # Raw logits on the MXU with f32 accumulation; post-scale the (Bp, Ct)
    # result by the inverse weight norms instead of normalizing the (Ct, D)
    # tile (removes Ct*D VPU multiplies and a W-sized VMEM temporary).
    raw = lax.dot_general(xn, w, (((1,), (1,)), ((), ())),
                          preferred_element_type=jnp.float32)       # (Bp, Ct)
    cosine = raw * inv_wn

    # ArcFace margin math, all f32.  The clamp only changes results where f32
    # rounding pushes |cosine| marginally above 1 (PyTorch would NaN there).
    sine = jnp.sqrt(jnp.maximum(1.0 - cosine * cosine, 0.0))
    phi = cosine * cos_m - sine * sin_m
    if easy_margin:
        phi = jnp.where(cosine > 0, phi, cosine)
    else:
        phi = jnp.where(cosine - th > 0, phi, cosine - mm)

    # One-hot select along the (globally offset) class axis; fold the scale in.
    b, c_tile = o_ref.shape
    col = (lax.broadcasted_iota(jnp.int32, (b, c_tile), 1)
           + pl.program_id(0) * c_tile)
    o_ref[...] = (jnp.where(col == label, phi, cosine) * s).astype(o_ref.dtype)


def _round_up(v, m):
    return (v + m - 1) // m * m


def arc_margin_product(x, weight, label, *, s=32.0, m=0.5, easy_margin=False,
                       block_c=None, compute_dtype=jnp.bfloat16,
                       out_dtype=jnp.float32):
    """Pallas TPU ArcMarginProduct forward.

    x: (B, D), weight: (C, D), label: (B,) int -> (B, C) out_dtype.

    Note: compute_dtype=bf16 (default) trades ~1e-1 absolute error vs the f32
    PyTorch reference for ~2x less W streaming; pass jnp.float32 for parity.
    """
    B, D = x.shape
    C, D2 = weight.shape
    assert D == D2, (D, D2)

    cd = jnp.dtype(compute_dtype)
    od = jnp.dtype(out_dtype)

    # Class-tile size: lane-dense multiple of 128.  Large default (2048) so
    # the ~0.35 us per-grid-step overhead is amortized against the W-tile DMA.
    c128 = _round_up(C, 128)
    if block_c is None:
        block_c = min(2048, c128)
        n = -(-c128 // block_c)
        if n > 1 and n % 2 == 1:
            # Rebalance to an even tile count so the "parallel" class axis
            # load-balances across the two TensorCores on v7x.
            block_c = min(block_c, _round_up(-(-c128 // (n + 1)), 128))
    block_c = min(_round_up(block_c, 128), c128)

    # Sub-32-bit MXU operands pack 16 rows per sublane group -> pad B to 16.
    sub = 16 if cd.itemsize < 4 else 8
    Bp = _round_up(B, sub)
    Cp = _round_up(C, block_c)       # lane-dense and divisible by the tile
    n_tiles = Cp // block_c

    # --- Wrapper-side prep (one cheap pass; W cast is needed anyway) --------
    # x: normalize rows once in f32, cast to compute dtype, pad batch.
    xf = x.astype(jnp.float32)
    inv_xn = lax.rsqrt(
        jnp.maximum(jnp.sum(xf * xf, axis=-1, keepdims=True), _EPS_SQ))
    xn = (xf * inv_xn).astype(compute_dtype)
    if Bp != B:
        xn = jnp.pad(xn, ((0, Bp - B), (0, 0)))

    # W: inverse row norms in f32 (fused by XLA with the cast read), then the
    # raw weight is streamed in compute dtype.  Padding rows/cols stay zero,
    # so padded logits are exactly 0 regardless of their (padded) inv_wn.
    wf = weight.astype(jnp.float32)
    inv_wn = lax.rsqrt(
        jnp.maximum(jnp.sum(wf * wf, axis=-1, keepdims=True), _EPS_SQ))
    inv_wn = inv_wn.reshape(1, C)
    wp = weight.astype(compute_dtype)
    if Cp != C:
        wp = jnp.pad(wp, ((0, Cp - C), (0, 0)))
        inv_wn = jnp.pad(inv_wn, ((0, 0), (0, Cp - C)))

    # TODO(synk): label could be a scalar-prefetch/SMEM operand; kept as a
    # tiny resident VMEM block for a robust vector compare.
    lp = label.reshape(-1).astype(jnp.int32)
    if Bp != B:
        lp = jnp.pad(lp, (0, Bp - B))
    lp = lp.reshape(Bp, 1)

    # --- VMEM budget & cost hint -------------------------------------------
    x_bytes = Bp * D * cd.itemsize
    w_bytes = block_c * D * cd.itemsize
    o_bytes = Bp * block_c * od.itemsize
    misc_bytes = block_c * 4 + Bp * 4
    interm_bytes = 6 * Bp * block_c * 4          # f32 cosine/sine/phi temps
    needed = 2 * (x_bytes + w_bytes + o_bytes + misc_bytes) + interm_bytes
    vmem_limit = int(min(max(needed + (4 << 20), 32 << 20), 64 << 20))

    cost = pl.CostEstimate(
        flops=2 * Bp * Cp * D,
        transcendentals=0,
        bytes_accessed=(Bp * D * cd.itemsize + Cp * D * cd.itemsize
                        + Cp * 4 + Bp * 4 + Bp * Cp * od.itemsize))

    kernel = functools.partial(
        _arc_margin_kernel,
        s=float(s), cos_m=math.cos(m), sin_m=math.sin(m),
        th=math.cos(math.pi - m), mm=math.sin(math.pi - m) * m,
        easy_margin=easy_margin)

    out = pl.pallas_call(
        kernel,
        out_shape=jax.ShapeDtypeStruct((Bp, Cp), out_dtype),
        grid_spec=pltpu.PrefetchScalarGridSpec(
            num_scalar_prefetch=0,
            grid=(n_tiles,),
            in_specs=[
                pl.BlockSpec((Bp, D), lambda j: (0, 0)),        # x: resident
                pl.BlockSpec((block_c, D), lambda j: (j, 0)),   # W: streamed
                pl.BlockSpec((1, block_c), lambda j: (0, j)),   # inv_wn
                pl.BlockSpec((Bp, 1), lambda j: (0, 0)),        # label
            ],
            out_specs=pl.BlockSpec((Bp, block_c), lambda j: (0, j)),
        ),
        compiler_params=pltpu.CompilerParams(
            # Class tiles are independent -> shard across TensorCores (v7x).
            dimension_semantics=("parallel",),
            vmem_limit_bytes=vmem_limit),
        cost_estimate=cost,
    )(xn, wp, inv_wn, lp)

    return out[:B, :C]


def _reference(x, weight, label, *, s=32.0, m=0.5, easy_margin=False):
    eps = 1e-12
    xn = x / jnp.maximum(jnp.linalg.norm(x, axis=-1, keepdims=True), eps)
    wn = weight / jnp.maximum(jnp.linalg.norm(weight, axis=-1, keepdims=True), eps)
    cosine = xn @ wn.T
    sine = jnp.sqrt(jnp.maximum(1.0 - cosine ** 2, 0.0))
    phi = cosine * math.cos(m) - sine * math.sin(m)
    th = math.cos(math.pi - m)
    mm = math.sin(math.pi - m) * m
    if easy_margin:
        phi = jnp.where(cosine > 0, phi, cosine)
    else:
        phi = jnp.where(cosine - th > 0, phi, cosine - mm)
    one_hot = jax.nn.one_hot(label, cosine.shape[1], dtype=cosine.dtype)
    return (one_hot * phi + (1.0 - one_hot) * cosine) * s


if __name__ == "__main__":
    in_features, out_features = 128, 200
    batch = 8

    key = jax.random.PRNGKey(0)
    kx, kw, kl = jax.random.split(key, 3)

    # Deterministic xavier_uniform_-style init on (out_features, in_features).
    bound = math.sqrt(6.0 / (in_features + out_features))
    weight = jax.random.uniform(
        kw, (out_features, in_features), jnp.float32, minval=-bound, maxval=bound)
    x = jax.random.normal(kx, (batch, in_features), jnp.float32)
    label = jax.random.randint(kl, (batch,), 0, out_features, jnp.int32)

    ref = _reference(x, weight, label)

    # f32 MXU path: matches the PyTorch module to tight tolerance.
    # block_c=128 -> padded C=256, 2 class tiles: exercises the tiled path.
    out_f32 = arc_margin_product(
        x, weight, label, block_c=128, compute_dtype=jnp.float32)
    out_f32 = jax.block_until_ready(out_f32)
    assert out_f32.shape == (batch, out_features)
    err_f32 = float(jnp.max(jnp.abs(out_f32 - ref)))
    assert jnp.allclose(out_f32, ref, atol=2e-4, rtol=1e-4), err_f32

    # Default bf16-streamed-W / f32-accumulate path (single class tile at this
    # size): looser tolerance, exercises the default block_c selection.
    out_bf16 = arc_margin_product(x, weight, label)
    out_bf16 = jax.block_until_ready(out_bf16)
    assert out_bf16.shape == (batch, out_features)
    err_bf16 = float(jnp.max(jnp.abs(out_bf16 - ref)))
    assert jnp.allclose(out_bf16, ref, atol=1.5e-1, rtol=1e-2), err_bf16

    print("KERNEL_OK")
</pallas_src>

<mosaic_0001>
module attributes {stable_mosaic.version = 11 : i64} {
  func.func @_arc_margin_kernel(%arg0: i32, %arg1: memref<8x128xf32, #tpu.memory_space<vmem>>, %arg2: memref<128x128xf32, #tpu.memory_space<vmem>>, %arg3: memref<1x128xf32, #tpu.memory_space<vmem>>, %arg4: memref<8x1xi32, #tpu.memory_space<vmem>>, %arg5: memref<8x128xf32, #tpu.memory_space<vmem>>) attributes {dimension_semantics = [#tpu.dimension_semantics<parallel>], iteration_bounds = array<i64: 2>, scalar_prefetch = 0 : i64, scratch_operands = 0 : i64, tpu.core_type = #tpu.core_type<tc>, window_params = [{pipeline_mode = #tpu.pipeline_mode<synchronous>, transform_indices = @transform_0, window_bounds = array<i64: 8, 128>}, {transform_indices = @transform_1, window_bounds = array<i64: 128, 128>}, {transform_indices = @transform_2, window_bounds = array<i64: 1, 128>}, {pipeline_mode = #tpu.pipeline_mode<synchronous>, transform_indices = @transform_3, window_bounds = array<i64: 8, 1>}, {transform_indices = @transform_4, window_bounds = array<i64: 8, 128>}]} {
    %c0 = arith.constant 0 : index
    %c0_0 = arith.constant 0 : index
    %0 = vector.load %arg1[%c0, %c0_0] : memref<8x128xf32, #tpu.memory_space<vmem>>, vector<8x128xf32>
    %c0_1 = arith.constant 0 : index
    %c0_2 = arith.constant 0 : index
    %1 = vector.load %arg2[%c0_1, %c0_2] : memref<128x128xf32, #tpu.memory_space<vmem>>, vector<128x128xf32>
    %c0_3 = arith.constant 0 : index
    %c0_4 = arith.constant 0 : index
    %2 = vector.load %arg3[%c0_3, %c0_4] : memref<1x128xf32, #tpu.memory_space<vmem>>, vector<1x128xf32>
    %c0_5 = arith.constant 0 : index
    %c0_6 = arith.constant 0 : index
    %3 = vector.load %arg4[%c0_5, %c0_6] : memref<8x1xi32, #tpu.memory_space<vmem>>, vector<8x1xi32>
    %cst = arith.constant dense<0.000000e+00> : vector<8x128xf32>
    %4 = tpu.matmul %0, %1, %cst {dimension_numbers = #tpu.dot_dimension_numbers<[1], [1], [0], [0], [0, 0, 1, 0], [], []>} : vector<8x128xf32>, vector<128x128xf32>, vector<8x128xf32> -> vector<8x128xf32>
    %5 = vector.broadcast %2 : vector<1x128xf32> to vector<8x128xf32>
    %6 = arith.mulf %4, %5 : vector<8x128xf32>
    %7 = arith.mulf %6, %6 : vector<8x128xf32>
    %cst_7 = arith.constant 1.000000e+00 : f32
    %8 = vector.broadcast %cst_7 : f32 to vector<8x128xf32>
    %9 = arith.subf %8, %7 : vector<8x128xf32>
    %cst_8 = arith.constant 0.000000e+00 : f32
    %10 = vector.broadcast %cst_8 : f32 to vector<8x128xf32>
    %11 = arith.maximumf %9, %10 : vector<8x128xf32>
    %12 = math.sqrt %11 : vector<8x128xf32>
    %cst_9 = arith.constant 0.87758255 : f32
    %13 = vector.broadcast %cst_9 : f32 to vector<8x128xf32>
    %14 = arith.mulf %6, %13 : vector<8x128xf32>
    %cst_10 = arith.constant 0.47942555 : f32
    %15 = vector.broadcast %cst_10 : f32 to vector<8x128xf32>
    %16 = arith.mulf %12, %15 : vector<8x128xf32>
    %17 = arith.subf %14, %16 : vector<8x128xf32>
    %cst_11 = arith.constant -0.87758255 : f32
    %18 = vector.broadcast %cst_11 : f32 to vector<8x128xf32>
    %19 = arith.subf %6, %18 : vector<8x128xf32>
    %cst_12 = arith.constant 0.000000e+00 : f32
    %20 = vector.broadcast %cst_12 : f32 to vector<8x128xf32>
    %21 = arith.cmpf ogt, %19, %20 : vector<8x128xf32>
    %cst_13 = arith.constant 0.239712775 : f32
    %22 = vector.broadcast %cst_13 : f32 to vector<8x128xf32>
    %23 = arith.subf %6, %22 : vector<8x128xf32>
    %24 = arith.select %21, %17, %23 : vector<8x128xi1>, vector<8x128xf32>
    %25 = tpu.iota {dimensions = array<i32: 1>} : vector<8x128xi32>
    %c128_i32 = arith.constant 128 : i32
    %26 = arith.muli %arg0, %c128_i32 : i32
    %27 = vector.broadcast %26 : i32 to vector<8x128xi32>
    %28 = arith.addi %25, %27 : vector<8x128xi32>
    %29 = vector.broadcast %3 : vector<8x1xi32> to vector<8x128xi32>
    %30 = arith.cmpi eq, %28, %29 : vector<8x128xi32>
    %31 = arith.select %30, %24, %6 : vector<8x128xi1>, vector<8x128xf32>
    %cst_14 = arith.constant 3.200000e+01 : f32
    %32 = vector.broadcast %cst_14 : f32 to vector<8x128xf32>
    %33 = arith.mulf %31, %32 : vector<8x128xf32>
    %c0_15 = arith.constant 0 : index
    %c0_16 = arith.constant 0 : index
    %34 = vector.load %arg5[%c0_15, %c0_16] : memref<8x128xf32, #tpu.memory_space<vmem>>, vector<8x128xf32>
    tpu.vector_store %arg5[%c0_15, %c0_16], %33 {strides = array<i32>} : memref<8x128xf32, #tpu.memory_space<vmem>>, vector<8x128xf32>,
    return
  }
  func.func @transform_0(%arg0: i32) -> (i32, i32) {
    %c0_i32 = arith.constant 0 : i32
    %c0_i32_0 = arith.constant 0 : i32
    %c0_i32_1 = arith.constant 0 : i32
    return %c0_i32, %c0_i32_0 : i32, i32
  }
  func.func @transform_1(%arg0: i32) -> (i32, i32) {
    %c0_i32 = arith.constant 0 : i32
    %c0_i32_0 = arith.constant 0 : i32
    return %arg0, %c0_i32 : i32, i32
  }
  func.func @transform_2(%arg0: i32) -> (i32, i32) {
    %c0_i32 = arith.constant 0 : i32
    %c0_i32_0 = arith.constant 0 : i32
    return %c0_i32, %arg0 : i32, i32
  }
  func.func @transform_3(%arg0: i32) -> (i32, i32) {
    %c0_i32 = arith.constant 0 : i32
    %c0_i32_0 = arith.constant 0 : i32
    %c0_i32_1 = arith.constant 0 : i32
    return %c0_i32, %c0_i32_0 : i32, i32
  }
  func.func @transform_4(%arg0: i32) -> (i32, i32) {
    %c0_i32 = arith.constant 0 : i32
    %c0_i32_0 = arith.constant 0 : i32
    return %c0_i32, %arg0 : i32, i32
  }
}

</mosaic_0001>

<bundles_post_ra>
// kernel: tpu_custom_call.1
= control target key start
LH: loop header
LB: loop body
LE: loop exit
PB: predicated region body
PF: predicated region fallthrough
CT: control target
= control target key end

     0   :  { %9 = vsyncpa [#allocation3], 0  ;;  %s919_s0 = inlined_call_operand.vmem [shape: f32[8,128], index: 0, kind: input, shape index: {}]   ;;  %s920_s1 = inlined_call_operand.hbm [shape: f32[256,128], index: 1, kind: input, shape index: {}]   ;;  %s921_s2 = inlined_call_operand.vmem [shape: f32[1,256], index: 2, kind: input, shape index: {}]   ;;  %s922_s3 = inlined_call_operand.vmem [shape: s32[8,1], index: 3, kind: input, shape index: {}]   ;;  %s923_s4 = inlined_call_operand.hbm [shape: f32[8,256], index: 4, kind: output, shape index: {}]  }
   0x1   :  { %11 = vsyncpa [#allocation3 + $0x1], 0 }
   0x2   :  { %12 = vsyncpa [#allocation4], 0 }
   0x3   :  { %14 = vsyncpa [#allocation4 + $0x1], 0  ;;  %s729_s15 = smov 0   ;;  %s731_s16 = smov 0  }
   0x4   :  { %s733_s17 = smov 0   ;;  %s735_s18 = smov 0  }
   0x5 LB: > { %s750_s19 = sadd.s32 4294967295, %s694_s18   ;;  %s449_s20 = sadd.s32 4294967294, %s694_s18   ;;  %s694_s18 = sphi %s735_s18, %s936_s18   ;;  %s690_s17 = sphi %s733_s17, %s935_s17   ;;  %s686_s16 = sphi %s731_s16, %s934_s16   ;;  %s682_s15 = sphi %s729_s15, %s933_s15  }
   0x6   : > { %s754_s21 = sadd.s32 1, %s694_s18   ;;  %s48_s22 = sadd.s32 1, %s690_s17 }
   0x7   : > { %s45_s23 = ssub.s32 %s694_s18, %s754_s21  ;;  %p55_p0 = scmp.ne.s32.totalorder %s690_s17, %s686_s16 }
   0x8   : > { %p46_p1 = scmp.eq.s32.totalorder %s45_s23, 0  ;;  %p56_p2 = scmp.eq.s32.totalorder %s694_s18, 0 }
   0x9   : > { %p61_p3 = scmp.ne.s32.totalorder %s686_s16, %s682_s15  ;;  %p62_p4 = scmp.eq.s32.totalorder %s750_s19, 0 }
   0xa   : > { %s766_s24 = scalar_select %p46_p1, %s690_s17, %s48_s22  }
   0xb   : > { %p768_p5 = por %p56_p2, %p55_p0  ;;  %p772_p6 = por %p62_p4, %p61_p3 }
   0xc   : > { %p132_p7 = scmp.eq.s32.totalorder %s750_s19, 1  ;;  %p138_p8 = scmp.eq.s32.totalorder %s449_s20, 1 }
   0xd   : > { %p555_p10 = scmp.lt.s32.totalorder %s694_s18, 2  ;;  %s164_s29 = sand.u32 1, %s690_s17  }
   0xe   : > { %p779_p11 = por %p132_p7, %p55_p0  ;;  %p783_p12 = por %p138_p8, %p61_p3 }
   0xf   : > { %s466_s30 = sshll.u32 %s694_s18, 11  ;;  %s452_s5 = sshll.u32 %s164_s29, 7 }
  0x10   : > { %s927_s27 = scalar_select %p779_p11, 1, 0 }
  0x11   : > { %s928_s28 = scalar_select %p783_p12, 1, 0 }
  0x12   : > { %s792_s8 = scalar_lea.hbm %s920_s1, %s466_s30  ;;  %s168_s9 = scalar_lea.vmem [#allocation2], %s452_s5 }
  0x13   : > { %s175_s10 = sshll.u32 %s168_s9, 4  ;;  %p796_p13 = pnand %p555_p10, %p768_p5  ;;  %s800_s10 = int_to_ptr.vmem [resolvable:$true] %s175_s10 }
  0x14   : > { %s802_s12 = scalar_lea.sflag [#allocation3], %s164_s29  ;;  %s598_s13 = scalar_lea.hbm %s792_s8, 2048 }
  0x15   : > { %p599_p0 = scmp.ne.s32.totalorder %s792_s8, %s598_s13  ;;  %p600_p1 = pneg %p796_p13 }
  0x16   : > { %s603_s22 = scalar_lea.hbm %s920_s1, 4096  ;;  %p604_p4 = scmp.lt.u32.totalorder %s792_s8, %s920_s1 }
  0x17   : > { %p601_p2 = pnand %p600_p1, %p599_p0  ;;  %p605_p5 = scmp.lt.u32.totalorder %s603_s22, %s598_s13 }
  0x18   : > { %p607_p8 = scmp.lt.u32.totalorder %s598_s13, %s792_s8 }
  0x19   : > { %p602_p3 = pneg %p601_p2  ;;  %p606_p7 = por %p605_p5, %p604_p4 }
  0x1b   : > { %p608_p10 = por %p607_p8, %p606_p7 }
  0x1d   : > { %p609_p9 = pnand %p608_p10, %p602_p3 }
  0x1f   : > { %612 = shalt.err (!%p609_p9)
}
  0x20   : > { %s613_s29 = scalar_lea.vmem %s800_s10, 2048  ;;  %s696_s30 = smov [#allocation2]  }
  0x21   : > { %p614_p0 = scmp.ne.s32.totalorder %s800_s10, %s613_s29  ;;  %s618_s5 = sshll.u32 %s696_s30, 4  ;;  %s619_s5 = int_to_ptr.vmem [resolvable:$false] %s618_s5 }
  0x22   : > { %s620_s6 = scalar_lea.vmem %s619_s5, 4096  ;;  %p621_p11 = scmp.lt.s32.totalorder %s800_s10, %s619_s5 }
  0x23   : > { %p616_p2 = pnand %p614_p0, %p600_p1  ;;  %p622_p4 = scmp.lt.s32.totalorder %s620_s6, %s613_s29 }
  0x25   : > { %p617_p12 = pneg %p616_p2  ;;  %p623_p5 = por %p622_p4, %p621_p11 }
  0x27   : > { %p624_p7 = pnand %p623_p5, %p617_p12 }
  0x29   : > { %627 = shalt.err (!%p624_p7)
}
  0x2a   : > { %s697_s7 = smov 128   ;;  %s698_s9 = smov 8  }
  0x2b   : > { %550 = dma.hbm_to_vmem [thread:$0]  (!%p796_p13), %s792_s8, 2048, %s800_s10, %s802_s12, %s697_s7, %s697_s7, %s698_s9  }
  0x2c   : > { %p455_p9 = scmp.ge.s32.totalorder %s694_s18, 1  ;;  %p189_p1 = scmp.lt.s32.totalorder %s694_s18, 3 }
  0x2e   : > { %p190_p3 = pnand %p455_p9, %p189_p1 }
  0x2f   : > { %s833_s13 = sand.u32 (!%p190_p3), 1, %s686_s16  }
  0x30   : > { %193 = sbr.rel (%p190_p3) target bundleno = 380 (0x17c), region = 36  ;;  %s456_s14 = sshll.u32 (!%p190_p3), %s833_s13, 7 }
  0x31   : > { %s196_s20 = scalar_lea.sflag (!%p190_p3), [#allocation3], %s833_s13  ;;  %s837_s22 = scalar_lea.vmem (!%p190_p3), [#allocation2], %s456_s14 }
  0x37   : > { %673 = dma.done.wait (%p772_p6), %s196_s20, 2048  }
  0x38   : > { %675 = vsyncadd (%p772_p6), %s196_s20, 4294965248  ;;  %v699_v0 = vmov 0.0|0.0   ;;  %vm700_vm0 = vmmov 0   ;;  %v701_v1 = vmov 0.0   ;;  %v702_v2 = vmov 0   ;;  %v232_v3 = vld [vmem:[%s837_s22] sm:$0xff] }
  0x39   : > { %519 = vmatprep.subr.bf16.mxu0 %v699_v0  ;;  %516 = vmatprep.mubr.msk.f32.mxu0 %vm700_vm0, %v701_v1  ;;  %v233_v4 = vld [vmem:[%s837_s22 + $0x8] sm:$0xff]  ;;  %v234_v6 = vld [vmem:[%s837_s22 + $0x10] sm:$0xff]  ;;  %v235_v7 = vld [vmem:[%s837_s22 + $0x18] sm:$0xff]  ;;  %p228_p6 = scmp.lt.s32.totalorder %s750_s19, 1  ;;  %v344_v36 = vlaneseq  ;;  %s461_s30 = sshll.u32 %s750_s19, 7 }
  0x3a   : > { %595 = vset.pattern.permute.xlu0 %v702_v2  ;;  %v520_v5 = vpack.c.bf16 %v233_v4, %v232_v3  ;;  %v249_v8 = vld [vmem:[%s922_s3] sm:$0xff]  ;;  %v523_v9 = vpack.c.bf16 %v235_v7, %v234_v6  ;;  %v237_v11 = vld [vmem:[%s837_s22 + $0x28] sm:$0xff]  ;;  %v238_v13 = vld [vmem:[%s837_s22 + $0x30] sm:$0xff]  ;;  %v347_v39 = vstv %s461_s30  ;;  %s457_s5 = sshll.u32 %s833_s13, 3  ;;  %s875_s14 = scalar_lea.hbm %s923_s4, %s461_s30 }
  0x3b   : > { %350 = vperm.xlu0 %595, %v249_v8   ;;  %v236_v10 = vld [vmem:[%s837_s22 + $0x20] sm:$0xff]  ;;  %v239_v14 = vld [vmem:[%s837_s22 + $0x38] sm:$0xff]  ;;  %v241_v17 = vld [vmem:[%s837_s22 + $0x48] sm:$0xff]  ;;  %s229_s12 = scalar_select %p228_p6, %s750_s19, 1  ;;  %v345_v37 = vand.u32 127, %v344_v36 }
  0x3c   : > { %521 = vmatpush3.bf16.xpose.msra.mxu0 %v520_v5  ;;  %v526_v12 = vpack.c.bf16 %v237_v11, %v236_v10  ;;  %v529_v15 = vpack.c.bf16 %v239_v14, %v238_v13  ;;  %v240_v16 = vld [vmem:[%s837_s22 + $0x40] sm:$0xff]  ;;  %v242_v19 = vld [vmem:[%s837_s22 + $0x50] sm:$0xff]  ;;  %v243_v20 = vld [vmem:[%s837_s22 + $0x58] sm:$0xff]  ;;  %s226_s19 = scalar_lea.vmem [#allocation5], %s457_s5  ;;  %s357_s20 = scalar_lea.sflag [#allocation4], %s833_s13 }
  0x3d   : > { %522 = vmatprep.subr.bf16.mxu0 %v699_v0  ;;  %v532_v18 = vpack.c.bf16 %v241_v17, %v240_v16  ;;  %v535_v21 = vpack.c.bf16 %v243_v20, %v242_v19  ;;  %v244_v22 = vld [vmem:[%s837_s22 + $0x60] sm:$0xff]  ;;  %v245_v23 = vld [vmem:[%s837_s22 + $0x68] sm:$0xff]  ;;  %v246_v25 = vld [vmem:[%s837_s22 + $0x70] sm:$0xff]  ;;  %s230_s29 = scalar_lea.vmem %s921_s2, %s229_s12  ;;  %v348_v42 = vadd.s32 %v347_v39, %v345_v37  ;;  %s370_s6 = sshll.u32 %s226_s19, 4  ;;  %s877_s6 = int_to_ptr.vmem [resolvable:$true] %s370_s6 }
  0x3e   : > { %v538_v24 = vpack.c.bf16 %v245_v23, %v244_v22  ;;  %v247_v26 = vld [vmem:[%s837_s22 + $0x78] sm:$0xff]  ;;  %v231_v28 = vld [vmem:[%s919_s0] sm:$0xff]  ;;  %s628_s22 = scalar_lea.vmem %s877_s6, 128  ;;  %p930_p12 = scmp.ne.s32.totalorder %s927_s27, 0 }
  0x3f   : > { %v541_v27 = vpack.c.bf16 %v247_v26, %v246_v25  ;;  %v458_v29 = vld [vmem:[%s230_s29] ss:$0 sm:$0xff]  ;;  %p629_p11 = scmp.ne.s32.totalorder %s877_s6, %s628_s22  ;;  %s703_s26 = smov [#allocation5]  }
  0x40   : > { %s632_s8 = sshll.u32 %s703_s26, 4  ;;  %s633_s8 = int_to_ptr.vmem [resolvable:$false] %s632_s8 }
  0x41   : > { %p630_p13 = pnand %p629_p11, %p930_p12  ;;  %s634_s10 = scalar_lea.vmem %s633_s8, 256 }
  0x42   : > { %p635_p10 = scmp.lt.s32.totalorder %s877_s6, %s633_s8  ;;  %p636_p0 = scmp.lt.s32.totalorder %s634_s10, %s628_s22 }
  0x43   : > { %p631_p8 = pneg %p630_p13 }
  0x44   : > { %524 = vmatpush3.bf16.xpose.msra.mxu0 %v523_v9  ;;  %p637_p2 = por %p636_p0, %p635_p10 }
  0x45   : > { %525 = vmatprep.subr.bf16.mxu0 %v699_v0 }
  0x46   : > { %p638_p4 = pnand %p637_p2, %p631_p8 }
  0x4c   : > { %527 = vmatpush3.bf16.xpose.msra.mxu0 %v526_v12 }
  0x4d   : > { %528 = vmatprep.subr.bf16.mxu0 %v699_v0 }
  0x54   : > { %530 = vmatpush3.bf16.xpose.msra.mxu0 %v529_v15 }
  0x55   : > { %531 = vmatprep.subr.bf16.mxu0 %v699_v0 }
  0x5c   : > { %533 = vmatpush3.bf16.xpose.msra.mxu0 %v532_v18 }
  0x5d   : > { %534 = vmatprep.subr.bf16.mxu0 %v699_v0 }
  0x64   : > { %536 = vmatpush3.bf16.xpose.msra.mxu0 %v535_v21 }
  0x65   : > { %537 = vmatprep.subr.bf16.mxu0 %v699_v0 }
  0x6c   : > { %539 = vmatpush3.bf16.xpose.msra.mxu0 %v538_v24 }
  0x6d   : > { %540 = vmatprep.subr.bf16.mxu0 %v699_v0 }
  0x74   : > { %542 = vmatpush3.bf16.xpose.msra.mxu0 %v541_v27 }
  0x7b   : > { %517 = vmatmul.mubr.f32.vlgmr.msra.gmra.mrb[0].mxu0 %v231_v28 }
  0xba   : > { %v351_v44 = vpop.permute.xlu0 %350 }
  0xbb   : > { %vm352_vm3 = vcmp.eq.s32.totalorder %v348_v42, %v351_v44 }
 0x14e   : > { %v316_v30 = vpop.f32.mrb[0].mxu0 }
 0x14f   : > { %v326_v31 = vmul.f32 %v458_v29, %v316_v30  ;;  %v518_v32 = vpop.f32.mrb[1].mxu0 }
 0x151   : > { %v327_v33 = vmul.f32 %v326_v31, %v326_v31  ;;  %v459_v46 = vadd.f32 0.87758255, %v326_v31  ;;  %v337_v47 = vmul.f32 0.87758255, %v326_v31  ;;  %v460_v50 = vadd.f32 -0.23971277, %v326_v31 }
 0x153   : > { %v328_v34 = vsub.f32 1.0, %v327_v33  ;;  %vm341_vm4 = vcmp.gt.f32.partialorder %v459_v46, 0.0 }
 0x155   : > { %v329_v35 = vmax.f32 %v328_v34, 0.0 }
 0x157   : > { %596 = vrsqrt.f32 %v329_v35  ;;  %vm332_vm1 = vcmp.eq.f32.partialorder %v329_v35, inf  ;;  %v335_v41 = vand.u32 2147483648, %v329_v35  ;;  %vm334_vm2 = vcmp.eq.f32.partialorder %v329_v35, 0.0 }
 0x161   : > { %v597_v38 = vpop.eup %596 }
 0x162   : > { %v331_v40 = vmul.f32 %v597_v38, %v329_v35 }
 0x164   : > { %v333_v43 = vsel %vm332_vm1, %v329_v35, %v331_v40 }
 0x165   : > { %v336_v45 = vsel %vm334_vm2, %v335_v41, %v333_v43 }
 0x166   : > { %v338_v48 = vmul.f32 0.47942555, %v336_v45 }
 0x168   : > { %v339_v49 = vsub.f32 %v337_v47, %v338_v48 }
 0x16a   : > { %v343_v51 = vsel %vm341_vm4, %v339_v49, %v460_v50 }
 0x16b   : > { %v353_v52 = vsel %vm352_vm3, %v343_v51, %v326_v31 }
 0x16c   : > { %v354_v53 = vmul.f32 32.0, %v353_v52 }
 0x16e   : > { %355 = vst [vmem:[%s226_s19] sm:$0xff] %v354_v53 }
 0x16f   : > { %641 = shalt.err (!%p638_p4)
}
 0x170   : > { %s642_s13 = scalar_lea.hbm %s875_s14, 128  ;;  %s646_s23 = scalar_lea.hbm %s923_s4, 256 }
 0x171   : > { %p643_p5 = scmp.ne.s32.totalorder %s875_s14, %s642_s13  ;;  %p647_p1 = scmp.lt.u32.totalorder %s875_s14, %s923_s4 }
 0x172   : > { %p648_p3 = scmp.lt.u32.totalorder %s646_s23, %s642_s13  ;;  %p650_p11 = scmp.lt.u32.totalorder %s642_s13, %s875_s14 }
 0x173   : > { %p644_p7 = pnand %p643_p5, %p930_p12 }
 0x174   : > { %p649_p6 = por %p648_p3, %p647_p1 }
 0x175   : > { %p645_p9 = pneg %p644_p7 }
 0x176   : > { %p651_p13 = por %p650_p11, %p649_p6 }
 0x178   : > { %p652_p8 = pnand %p651_p13, %p645_p9 }
 0x17a   : > { %655 = shalt.err (!%p652_p8)
}
 0x17b   : > { %545 = dma.vmem_to_hbm [thread:$0]  (%p930_p12), %s877_s6, 128, %s875_s14, %s357_s20  }
 0x17c PF: > { %s382_s30 = sand.u32 1, %s682_s15   ;;  %p931_p10 = scmp.ne.s32.totalorder %s928_s28, 0 }
 0x17d   : > { %p932_p0 = scmp.ge.s32.totalorder %s694_s18, 2  ;;  %s383_s5 = scalar_lea.sflag [#allocation4], %s382_s30 }
 0x17f   : > { %p552_p2 = pnand %p932_p0, %p931_p10 }
 0x181   : > { %677 = dma.done.wait (!%p552_p2), %s383_s5, 128  }
 0x182   : > { %679 = vsyncadd (!%p552_p2), %s383_s5, 4294967168  ;;  %p17_p4 = scmp.ge.s32.totalorder %s754_s21, 4   ;;  %s933_s15 = smov %s686_s16 }
 0x183   : > { %s934_s16 = smov %s690_s17  ;;  %s935_s17 = smov %s766_s24 }
 0x184   : > { %s936_s18 = smov %s754_s21  ;;  %19 = sbr.rel (!%p17_p4) target bundleno = 5 (0x5), region = 84 }
 0x18b   :  { %388 = vsyncpa [#allocation3], 1 }
 0x18c   :  { %390 = vsyncpa [#allocation3 + $0x1], 1 }
 0x18d   :  { %391 = vsyncpa [#allocation4], 1 }
 0x18e   :  { %393 = vsyncpa [#allocation4 + $0x1], 1 }

</bundles_post_ra>
